<compile_context>
chip_gen: v5e
topology: v5e:2x2
jax: 0.10.0
libtpu: 0.0.40
codegen_flags: <defaults>
</compile_context>

<pallas_src>
import jax
import jax.numpy as jnp
import numpy as np
from jax import lax
from jax.experimental import pallas as pl
from jax.experimental.pallas import tpu as pltpu


# ---------------------------------------------------------------------------
# Fused kernel: phase 0 = scatter-add segment sum, phase 1 = gather + mlp1 + GRUCell
# ---------------------------------------------------------------------------
def graph_conv_kernel(idx_col_ref, idx_row_ref, m_ref, x_ref, p_ref, out_ref, s_ref):
    """Grid = (2, T); phase = program_id(0), edge tile = program_id(1).

    idx_col_ref: [TE,1] int32 (edges on sublanes, for the scatter one-hot)
    idx_row_ref: [1,TE] int32 (edges on lanes, for the gather one-hot)
    m_ref:       [1,TE] f32   (per-edge messages, edges on lanes)
    x_ref:       [1,N_pad] f32 (node prior, resident)
    p_ref:       [16,16] f32  (packed mlp1 + GRUCell parameters, resident)
    out_ref:     [1,TE] f32   (lane-dense output row)
    s_ref:       [1,N_pad] f32 VMEM scratch (segment sums, persists across the grid)
    """
    f32 = jnp.float32
    phase = pl.program_id(0)
    N_pad = x_ref.shape[1]
    TE = m_ref.shape[1]
    m = m_ref[...]                                                         # [1, TE]

    @pl.when((phase == 0) & (pl.program_id(1) == 0))
    def _init():
        s_ref[...] = jnp.zeros_like(s_ref)

    @pl.when(phase == 0)
    def _scatter():
        idx = idx_col_ref[...]                                             # [TE, 1]
        # one-hot over nodes, nodes on lanes: onehot[e, n] = (idx[e] == n)
        node_ids = lax.broadcasted_iota(jnp.int32, (TE, N_pad), 1)
        onehot = (idx == node_ids).astype(f32)                             # padded edges (idx=-1) -> zero rows
        # segment sum as one MXU matmul: [1,TE] @ [TE,N_pad] -> [1,N_pad]
        s_ref[...] += jnp.dot(m, onehot, preferred_element_type=f32)
        out_ref[...] = jnp.zeros_like(out_ref)                             # placeholder; overwritten in phase 1

    @pl.when(phase == 1)
    def _update():
        idx = idx_row_ref[...]                                             # [1, TE]
        # one-hot over nodes, edges on lanes: onehot[n, e] = (idx[e] == n)
        node_ids = lax.broadcasted_iota(jnp.int32, (N_pad, TE), 0)
        onehot = (node_ids == idx).astype(f32)                             # [N_pad, TE]

        # gather segment sum AND node prior in one MXU matmul: [2,N_pad] @ [N_pad,TE]
        sx = jnp.concatenate([s_ref[...], x_ref[...]], axis=0)             # [2, N_pad]
        g = jnp.dot(sx, onehot, preferred_element_type=f32)                # [2, TE]
        extrinsic = g[0:1, :] - m                                          # [1, TE]
        x_j = g[1:2, :]                                                    # [1, TE]

        p = p_ref[...]                                                     # [16, 16]
        # mlp1: Linear(2,10) -> ReLU -> Linear(10,1), features on sublanes
        w1a = p[0:10, 0:1]                                                 # w1[:, 0]  [10,1]
        w1b = p[0:10, 1:2]                                                 # w1[:, 1]  [10,1]
        b1 = p[0:10, 2:3]                                                  # [10,1]
        h1 = jnp.maximum(w1a * extrinsic + w1b * x_j + b1, 0.0)            # [10, TE]
        w2 = p[10:11, 0:10]                                                # [1,10]
        b2 = p[10:11, 10:11]                                               # [1,1]
        mes = jnp.dot(w2, h1, preferred_element_type=f32) + b2             # [1, TE]

        # GRUCell(1,1): input = m, hidden = mes; gates (r,z,n) on sublanes
        wih = p[11:14, 0:1]
        bih = p[11:14, 1:2]
        whh = p[11:14, 2:3]
        bhh = p[11:14, 3:4]
        gi = wih * m + bih                                                 # [3, TE]
        gh = whh * mes + bhh                                               # [3, TE]
        r = jax.nn.sigmoid(gi[0:1, :] + gh[0:1, :])
        z = jax.nn.sigmoid(gi[1:2, :] + gh[1:2, :])
        n = jnp.tanh(gi[2:3, :] + r * gh[2:3, :])
        out_ref[...] = (1.0 - z) * n + z * mes                             # [1, TE] lane-dense store


# ---------------------------------------------------------------------------
# Wrapper
# ---------------------------------------------------------------------------
def _round_up(a, b):
    return ((a + b - 1) // b) * b


def _choose_te(E, N_pad, te_max, onehot_budget_bytes=4 << 20):
    """Edge-tile width: multiple of 128, capped by te_max and the one-hot VMEM budget."""
    te_cap = max(128, (onehot_budget_bytes // (4 * N_pad)) // 128 * 128)
    return max(128, min(_round_up(E, 128), te_max, te_cap))


def pack_params(params):
    """Pack the 8 tiny parameter tensors into one [16,16] f32 slab (single resident DMA)."""
    w1, b1, w2, b2, wih, bih, whh, bhh = params
    f32 = jnp.float32
    slab = jnp.zeros((16, 16), f32)
    slab = slab.at[0:10, 0:2].set(w1.astype(f32))              # Linear(2,10) weight
    slab = slab.at[0:10, 2].set(b1.astype(f32))                # Linear(2,10) bias
    slab = slab.at[10, 0:10].set(w2.astype(f32).reshape(10))   # Linear(10,1) weight
    slab = slab.at[10, 10].set(b2.astype(f32)[0])              # Linear(10,1) bias
    slab = slab.at[11:14, 0].set(wih.astype(f32).reshape(3))   # GRU W_ih (r,z,n)
    slab = slab.at[11:14, 1].set(bih.astype(f32))              # GRU b_ih
    slab = slab.at[11:14, 2].set(whh.astype(f32).reshape(3))   # GRU W_hh
    slab = slab.at[11:14, 3].set(bhh.astype(f32))              # GRU b_hh
    return slab


def graph_conv(m, edge_index, x, params, flow="source_to_target", te_max=512):
    """Forward pass. m: [E,1], edge_index: [2,E] int, x: [N] or [N,1]. Returns [E,1] f32."""
    f32 = jnp.float32
    x2 = x if x.ndim == 2 else x[:, None]
    j = 0 if flow == "source_to_target" else 1          # module uses edge_index[j] for both flows
    idx = edge_index[j].astype(jnp.int32)
    E = int(m.shape[0])
    N = int(x2.shape[0])

    # Tiling: edges on lanes, TE multiple of 128; padded edges get idx=-1 / m=0.
    N_pad = _round_up(N, 128)
    TE = _choose_te(E, N_pad, te_max)
    E_pad = _round_up(E, TE)
    T = E_pad // TE

    m_row = jnp.zeros((1, E_pad), f32).at[0, :E].set(m.reshape(E).astype(f32))
    idx_pad = jnp.full((E_pad,), -1, jnp.int32).at[:E].set(idx)
    x_row = jnp.zeros((1, N_pad), f32).at[0, :N].set(x2.reshape(N).astype(f32))
    slab = pack_params(params)

    # Single fused call: phase axis outer (0 = scatter, 1 = gather/update), edge tiles inner.
    # Both axes are "arbitrary" because the VMEM segment-sum scratch carries data across them.
    out_row = pl.pallas_call(
        graph_conv_kernel,
        out_shape=jax.ShapeDtypeStruct((1, E_pad), f32),
        grid=(2, T),
        in_specs=[
            pl.BlockSpec((TE, 1), lambda p, t: (t, 0)),      # idx column (edges on sublanes)
            pl.BlockSpec((1, TE), lambda p, t: (0, t)),      # idx row (edges on lanes)
            pl.BlockSpec((1, TE), lambda p, t: (0, t)),      # m tile (edges on lanes)
            pl.BlockSpec((1, N_pad), lambda p, t: (0, 0)),   # node prior x (resident)
            pl.BlockSpec((16, 16), lambda p, t: (0, 0)),     # packed parameters (resident)
        ],
        out_specs=pl.BlockSpec((1, TE), lambda p, t: (0, t)),
        scratch_shapes=[pltpu.VMEM((1, N_pad), f32)],        # segment-sum accumulator
        compiler_params=pltpu.CompilerParams(
            dimension_semantics=("arbitrary", "arbitrary")),
    )(idx_pad.reshape(E_pad, 1), idx_pad.reshape(1, E_pad), m_row, x_row, slab)

    return out_row[0, :E].reshape(E, 1)


# ---------------------------------------------------------------------------
# Reference + test
# ---------------------------------------------------------------------------
def init_params(key):
    ks = jax.random.split(key, 8)
    w1 = 0.5 * jax.random.normal(ks[0], (10, 2), jnp.float32)
    b1 = 0.1 * jax.random.normal(ks[1], (10,), jnp.float32)
    w2 = 0.5 * jax.random.normal(ks[2], (1, 10), jnp.float32)
    b2 = 0.1 * jax.random.normal(ks[3], (1,), jnp.float32)
    wih = 0.5 * jax.random.normal(ks[4], (3, 1), jnp.float32)
    bih = 0.1 * jax.random.normal(ks[5], (3,), jnp.float32)
    whh = 0.5 * jax.random.normal(ks[6], (3, 1), jnp.float32)
    bhh = 0.1 * jax.random.normal(ks[7], (3,), jnp.float32)
    return (w1, b1, w2, b2, wih, bih, whh, bhh)


def reference(m, edge_index, x, params, flow="source_to_target"):
    """Pure-JAX reference of the PyTorch forward (float32)."""
    x = x if x.ndim == 2 else x[:, None]
    j = 0 if flow == "source_to_target" else 1
    idx = edge_index[j]
    N = x.shape[0]
    w1, b1, w2, b2, wih, bih, whh, bhh = params
    s = jax.ops.segment_sum(m, idx, num_segments=N)
    extrinsic = s[idx] - m
    cat = jnp.concatenate([extrinsic, x[idx]], axis=1)
    h1 = jax.nn.relu(cat @ w1.T + b1)
    mes = h1 @ w2.T + b2
    gi = m @ wih.T + bih
    gh = mes @ whh.T + bhh
    r = jax.nn.sigmoid(gi[:, 0:1] + gh[:, 0:1])
    z = jax.nn.sigmoid(gi[:, 1:2] + gh[:, 1:2])
    n = jnp.tanh(gi[:, 2:3] + r * gh[:, 2:3])
    return (1.0 - z) * n + z * mes


def _run_case(key, E, N, te_max):
    k_m, k_x, k_e, k_p = jax.random.split(key, 4)
    m = jax.random.normal(k_m, (E, 1), jnp.float32)              # per-edge messages
    x = jax.random.normal(k_x, (N,), jnp.float32)                # per-node prior (1-D -> unsqueezed)
    edge_index = jax.random.randint(k_e, (2, E), 0, N, jnp.int32)
    params = init_params(k_p)                                    # flow='source_to_target' -> mlp1/rnn1

    out = graph_conv(m, edge_index, x, params, flow="source_to_target", te_max=te_max)
    out = jax.block_until_ready(out)
    ref = reference(m, edge_index, x, params, flow="source_to_target")

    assert out.shape == (E, 1)
    assert np.allclose(np.asarray(out), np.asarray(ref), atol=5e-4), \
        f"kernel/reference mismatch (E={E}, N={N})"


if __name__ == "__main__":
    key = jax.random.PRNGKey(0)
    k1, k2 = jax.random.split(key, 2)

    # small synthetic Tanner-graph-like problem: single edge tile, grid=(2,1)
    _run_case(k1, E=64, N=16, te_max=512)
    # larger problem exercising the edge-tiled grid (E_pad=1024, TE=256 -> grid=(2,4)) and N padding
    _run_case(k2, E=1000, N=200, te_max=256)

    print("KERNEL_OK")
</pallas_src>

<mosaic_0001>
module attributes {stable_mosaic.version = 11 : i64} {
  func.func @graph_conv_kernel(%arg0: i32, %arg1: i32, %arg2: memref<128x1xi32, #tpu.memory_space<vmem>>, %arg3: memref<1x128xi32, #tpu.memory_space<vmem>>, %arg4: memref<1x128xf32, #tpu.memory_space<vmem>>, %arg5: memref<1x128xf32, #tpu.memory_space<vmem>>, %arg6: memref<16x16xf32, #tpu.memory_space<vmem>>, %arg7: memref<1x128xf32, #tpu.memory_space<vmem>>, %arg8: memref<1x128xf32, #tpu.memory_space<vmem>>) attributes {dimension_semantics = [#tpu.dimension_semantics<arbitrary>, #tpu.dimension_semantics<arbitrary>], iteration_bounds = array<i64: 2, 1>, scalar_prefetch = 0 : i64, scratch_operands = 1 : i64, tpu.core_type = #tpu.core_type<tc>, window_params = [{transform_indices = @transform_0, window_bounds = array<i64: 128, 1>}, {transform_indices = @transform_1, window_bounds = array<i64: 1, 128>}, {transform_indices = @transform_2, window_bounds = array<i64: 1, 128>}, {pipeline_mode = #tpu.pipeline_mode<synchronous>, transform_indices = @transform_3, window_bounds = array<i64: 1, 128>}, {pipeline_mode = #tpu.pipeline_mode<synchronous>, transform_indices = @transform_4, window_bounds = array<i64: 16, 16>}, {transform_indices = @transform_5, window_bounds = array<i64: 1, 128>}]} {
    %c0 = arith.constant 0 : index
    %c0_0 = arith.constant 0 : index
    %0 = vector.load %arg4[%c0, %c0_0] : memref<1x128xf32, #tpu.memory_space<vmem>>, vector<1x128xf32>
    %c0_i32 = arith.constant 0 : i32
    %1 = arith.cmpi eq, %arg0, %c0_i32 : i32
    %c0_i32_1 = arith.constant 0 : i32
    %2 = arith.cmpi eq, %arg1, %c0_i32_1 : i32
    %3 = arith.andi %1, %2 : i1
    %4 = arith.extui %3 : i1 to i32
    %c0_i32_2 = arith.constant 0 : i32
    %5 = arith.cmpi ne, %4, %c0_i32_2 : i32
    scf.if %5 {
      %cst = arith.constant 0.000000e+00 : f32
      %12 = vector.broadcast %cst : f32 to vector<1x128xf32>
      %c0_6 = arith.constant 0 : index
      %c0_7 = arith.constant 0 : index
      %13 = vector.load %arg8[%c0_6, %c0_7] : memref<1x128xf32, #tpu.memory_space<vmem>>, vector<1x128xf32>
      tpu.vector_store %arg8[%c0_6, %c0_7], %12 {strides = array<i32>} : memref<1x128xf32, #tpu.memory_space<vmem>>, vector<1x128xf32>,
    } else {
    }
    %c0_i32_3 = arith.constant 0 : i32
    %6 = arith.cmpi eq, %arg0, %c0_i32_3 : i32
    %7 = arith.extui %6 : i1 to i32
    %c0_i32_4 = arith.constant 0 : i32
    %8 = arith.cmpi ne, %7, %c0_i32_4 : i32
    scf.if %8 {
      %c0_6 = arith.constant 0 : index
      %c0_7 = arith.constant 0 : index
      %12 = vector.load %arg2[%c0_6, %c0_7] : memref<128x1xi32, #tpu.memory_space<vmem>>, vector<128x1xi32>
      %13 = tpu.iota {dimensions = array<i32: 1>} : vector<128x128xi32>
      %14 = vector.broadcast %12 : vector<128x1xi32> to vector<128x128xi32>
      %15 = arith.cmpi eq, %14, %13 : vector<128x128xi32>
      %16 = arith.extui %15 : vector<128x128xi1> to vector<128x128xi32>
      %17 = arith.sitofp %16 : vector<128x128xi32> to vector<128x128xf32>
      %c0_8 = arith.constant 0 : index
      %c0_9 = arith.constant 0 : index
      %18 = vector.load %arg8[%c0_8, %c0_9] : memref<1x128xf32, #tpu.memory_space<vmem>>, vector<1x128xf32>
      %cst = arith.constant dense<0.000000e+00> : vector<1x128xf32>
      %19 = tpu.matmul %0, %17, %cst {dimension_numbers = #tpu.dot_dimension_numbers<[1], [0], [0], [1], [0, 0, 1, 1], [], []>} : vector<1x128xf32>, vector<128x128xf32>, vector<1x128xf32> -> vector<1x128xf32>
      %20 = arith.addf %18, %19 : vector<1x128xf32>
      %c0_10 = arith.constant 0 : index
      %c0_11 = arith.constant 0 : index
      %21 = vector.load %arg8[%c0_10, %c0_11] : memref<1x128xf32, #tpu.memory_space<vmem>>, vector<1x128xf32>
      tpu.vector_store %arg8[%c0_10, %c0_11], %20 {strides = array<i32>} : memref<1x128xf32, #tpu.memory_space<vmem>>, vector<1x128xf32>,
      %cst_12 = arith.constant 0.000000e+00 : f32
      %22 = vector.broadcast %cst_12 : f32 to vector<1x128xf32>
      %c0_13 = arith.constant 0 : index
      %c0_14 = arith.constant 0 : index
      %23 = vector.load %arg7[%c0_13, %c0_14] : memref<1x128xf32, #tpu.memory_space<vmem>>, vector<1x128xf32>
      tpu.vector_store %arg7[%c0_13, %c0_14], %22 {strides = array<i32>} : memref<1x128xf32, #tpu.memory_space<vmem>>, vector<1x128xf32>,
    } else {
    }
    %c1_i32 = arith.constant 1 : i32
    %9 = arith.cmpi eq, %arg0, %c1_i32 : i32
    %10 = arith.extui %9 : i1 to i32
    %c0_i32_5 = arith.constant 0 : i32
    %11 = arith.cmpi ne, %10, %c0_i32_5 : i32
    scf.if %11 {
      %c0_6 = arith.constant 0 : index
      %c0_7 = arith.constant 0 : index
      %12 = vector.load %arg3[%c0_6, %c0_7] : memref<1x128xi32, #tpu.memory_space<vmem>>, vector<1x128xi32>
      %13 = tpu.iota {dimensions = array<i32: 0>} : vector<128x128xi32>
      %14 = vector.broadcast %12 : vector<1x128xi32> to vector<128x128xi32>
      %15 = arith.cmpi eq, %13, %14 : vector<128x128xi32>
      %16 = arith.extui %15 : vector<128x128xi1> to vector<128x128xi32>
      %17 = arith.sitofp %16 : vector<128x128xi32> to vector<128x128xf32>
      %c0_8 = arith.constant 0 : index
      %c0_9 = arith.constant 0 : index
      %18 = vector.load %arg8[%c0_8, %c0_9] : memref<1x128xf32, #tpu.memory_space<vmem>>, vector<1x128xf32>
      %c0_10 = arith.constant 0 : index
      %c0_11 = arith.constant 0 : index
      %19 = vector.load %arg5[%c0_10, %c0_11] : memref<1x128xf32, #tpu.memory_space<vmem>>, vector<1x128xf32>
      %20 = tpu.concatenate %18, %19 in 0 : vector<1x128xf32>, vector<1x128xf32> -> vector<2x128xf32>
      %cst = arith.constant dense<0.000000e+00> : vector<2x128xf32>
      %21 = tpu.matmul %20, %17, %cst {dimension_numbers = #tpu.dot_dimension_numbers<[1], [0], [0], [1], [0, 0, 1, 1], [], []>} : vector<2x128xf32>, vector<128x128xf32>, vector<2x128xf32> -> vector<2x128xf32>
      %22 = vector.extract_strided_slice %21 {offsets = [0, 0], sizes = [1, 128], strides = [1, 1]} : vector<2x128xf32> to vector<1x128xf32>
      %23 = arith.subf %22, %0 : vector<1x128xf32>
      %24 = vector.extract_strided_slice %21 {offsets = [1, 0], sizes = [1, 128], strides = [1, 1]} : vector<2x128xf32> to vector<1x128xf32>
      %c0_12 = arith.constant 0 : index
      %c0_13 = arith.constant 0 : index
      %25 = vector.load %arg6[%c0_12, %c0_13] : memref<16x16xf32, #tpu.memory_space<vmem>>, vector<16x16xf32>
      %26 = vector.extract_strided_slice %25 {offsets = [0, 0], sizes = [10, 1], strides = [1, 1]} : vector<16x16xf32> to vector<10x1xf32>
      %27 = vector.extract_strided_slice %25 {offsets = [0, 1], sizes = [10, 1], strides = [1, 1]} : vector<16x16xf32> to vector<10x1xf32>
      %28 = vector.extract_strided_slice %25 {offsets = [0, 2], sizes = [10, 1], strides = [1, 1]} : vector<16x16xf32> to vector<10x1xf32>
      %29 = vector.broadcast %26 : vector<10x1xf32> to vector<10x128xf32>
      %30 = vector.broadcast %23 : vector<1x128xf32> to vector<10x128xf32>
      %31 = arith.mulf %29, %30 : vector<10x128xf32>
      %32 = vector.broadcast %27 : vector<10x1xf32> to vector<10x128xf32>
      %33 = vector.broadcast %24 : vector<1x128xf32> to vector<10x128xf32>
      %34 = arith.mulf %32, %33 : vector<10x128xf32>
      %35 = arith.addf %31, %34 : vector<10x128xf32>
      %36 = vector.broadcast %28 : vector<10x1xf32> to vector<10x128xf32>
      %37 = arith.addf %35, %36 : vector<10x128xf32>
      %cst_14 = arith.constant 0.000000e+00 : f32
      %38 = vector.broadcast %cst_14 : f32 to vector<10x128xf32>
      %39 = arith.maximumf %37, %38 : vector<10x128xf32>
      %40 = vector.extract_strided_slice %25 {offsets = [10, 0], sizes = [1, 10], strides = [1, 1]} : vector<16x16xf32> to vector<1x10xf32>
      %41 = vector.extract_strided_slice %25 {offsets = [10, 10], sizes = [1, 1], strides = [1, 1]} : vector<16x16xf32> to vector<1x1xf32>
      %cst_15 = arith.constant dense<0.000000e+00> : vector<1x128xf32>
      %42 = tpu.matmul %40, %39, %cst_15 {dimension_numbers = #tpu.dot_dimension_numbers<[1], [0], [0], [1], [0, 0, 1, 1], [], []>} : vector<1x10xf32>, vector<10x128xf32>, vector<1x128xf32> -> vector<1x128xf32>
      %43 = vector.broadcast %41 : vector<1x1xf32> to vector<1x128xf32>
      %44 = arith.addf %42, %43 : vector<1x128xf32>
      %45 = vector.extract_strided_slice %25 {offsets = [11, 0], sizes = [3, 1], strides = [1, 1]} : vector<16x16xf32> to vector<3x1xf32>
      %46 = vector.extract_strided_slice %25 {offsets = [11, 1], sizes = [3, 1], strides = [1, 1]} : vector<16x16xf32> to vector<3x1xf32>
      %47 = vector.extract_strided_slice %25 {offsets = [11, 2], sizes = [3, 1], strides = [1, 1]} : vector<16x16xf32> to vector<3x1xf32>
      %48 = vector.extract_strided_slice %25 {offsets = [11, 3], sizes = [3, 1], strides = [1, 1]} : vector<16x16xf32> to vector<3x1xf32>
      %49 = vector.broadcast %45 : vector<3x1xf32> to vector<3x128xf32>
      %50 = vector.broadcast %0 : vector<1x128xf32> to vector<3x128xf32>
      %51 = arith.mulf %49, %50 : vector<3x128xf32>
      %52 = vector.broadcast %46 : vector<3x1xf32> to vector<3x128xf32>
      %53 = arith.addf %51, %52 : vector<3x128xf32>
      %54 = vector.broadcast %47 : vector<3x1xf32> to vector<3x128xf32>
      %55 = vector.broadcast %44 : vector<1x128xf32> to vector<3x128xf32>
      %56 = arith.mulf %54, %55 : vector<3x128xf32>
      %57 = vector.broadcast %48 : vector<3x1xf32> to vector<3x128xf32>
      %58 = arith.addf %56, %57 : vector<3x128xf32>
      %59 = vector.extract_strided_slice %53 {offsets = [0, 0], sizes = [1, 128], strides = [1, 1]} : vector<3x128xf32> to vector<1x128xf32>
      %60 = vector.extract_strided_slice %58 {offsets = [0, 0], sizes = [1, 128], strides = [1, 1]} : vector<3x128xf32> to vector<1x128xf32>
      %61 = arith.addf %59, %60 : vector<1x128xf32>
      %62 = arith.negf %61 : vector<1x128xf32>
      %63 = math.exp %62 : vector<1x128xf32>
      %cst_16 = arith.constant 1.000000e+00 : f32
      %64 = vector.broadcast %cst_16 : f32 to vector<1x128xf32>
      %65 = arith.addf %64, %63 : vector<1x128xf32>
      %66 = arith.divf %64, %65 : vector<1x128xf32>
      %67 = vector.extract_strided_slice %53 {offsets = [1, 0], sizes = [1, 128], strides = [1, 1]} : vector<3x128xf32> to vector<1x128xf32>
      %68 = vector.extract_strided_slice %58 {offsets = [1, 0], sizes = [1, 128], strides = [1, 1]} : vector<3x128xf32> to vector<1x128xf32>
      %69 = arith.addf %67, %68 : vector<1x128xf32>
      %70 = arith.negf %69 : vector<1x128xf32>
      %71 = math.exp %70 : vector<1x128xf32>
      %cst_17 = arith.constant 1.000000e+00 : f32
      %72 = vector.broadcast %cst_17 : f32 to vector<1x128xf32>
      %73 = arith.addf %72, %71 : vector<1x128xf32>
      %74 = arith.divf %72, %73 : vector<1x128xf32>
      %75 = vector.extract_strided_slice %53 {offsets = [2, 0], sizes = [1, 128], strides = [1, 1]} : vector<3x128xf32> to vector<1x128xf32>
      %76 = vector.extract_strided_slice %58 {offsets = [2, 0], sizes = [1, 128], strides = [1, 1]} : vector<3x128xf32> to vector<1x128xf32>
      %77 = arith.mulf %66, %76 : vector<1x128xf32>
      %78 = arith.addf %75, %77 : vector<1x128xf32>
      %79 = math.tanh %78 : vector<1x128xf32>
      %cst_18 = arith.constant 1.000000e+00 : f32
      %80 = vector.broadcast %cst_18 : f32 to vector<1x128xf32>
      %81 = arith.subf %80, %74 : vector<1x128xf32>
      %82 = arith.mulf %81, %79 : vector<1x128xf32>
      %83 = arith.mulf %74, %44 : vector<1x128xf32>
      %84 = arith.addf %82, %83 : vector<1x128xf32>
      %c0_19 = arith.constant 0 : index
      %c0_20 = arith.constant 0 : index
      %85 = vector.load %arg7[%c0_19, %c0_20] : memref<1x128xf32, #tpu.memory_space<vmem>>, vector<1x128xf32>
      tpu.vector_store %arg7[%c0_19, %c0_20], %84 {strides = array<i32>} : memref<1x128xf32, #tpu.memory_space<vmem>>, vector<1x128xf32>,
    } else {
    }
    return
  }
  func.func @transform_0(%arg0: i32, %arg1: i32) -> (i32, i32) {
    %c0_i32 = arith.constant 0 : i32
    %c0_i32_0 = arith.constant 0 : i32
    return %arg1, %c0_i32 : i32, i32
  }
  func.func @transform_1(%arg0: i32, %arg1: i32) -> (i32, i32) {
    %c0_i32 = arith.constant 0 : i32
    %c0_i32_0 = arith.constant 0 : i32
    return %c0_i32, %arg1 : i32, i32
  }
  func.func @transform_2(%arg0: i32, %arg1: i32) -> (i32, i32) {
    %c0_i32 = arith.constant 0 : i32
    %c0_i32_0 = arith.constant 0 : i32
    return %c0_i32, %arg1 : i32, i32
  }
  func.func @transform_3(%arg0: i32, %arg1: i32) -> (i32, i32) {
    %c0_i32 = arith.constant 0 : i32
    %c0_i32_0 = arith.constant 0 : i32
    %c0_i32_1 = arith.constant 0 : i32
    return %c0_i32, %c0_i32_0 : i32, i32
  }
  func.func @transform_4(%arg0: i32, %arg1: i32) -> (i32, i32) {
    %c0_i32 = arith.constant 0 : i32
    %c0_i32_0 = arith.constant 0 : i32
    %c0_i32_1 = arith.constant 0 : i32
    return %c0_i32, %c0_i32_0 : i32, i32
  }
  func.func @transform_5(%arg0: i32, %arg1: i32) -> (i32, i32) {
    %c0_i32 = arith.constant 0 : i32
    %c0_i32_0 = arith.constant 0 : i32
    return %c0_i32, %arg1 : i32, i32
  }
}

</mosaic_0001>

<bundles_post_ra>
// kernel: tpu_custom_call.1
= control target key start
LH: loop header
LB: loop body
LE: loop exit
PB: predicated region body
PF: predicated region fallthrough
CT: control target
= control target key end

     0   :  { %10 = vsyncpa [#allocation4], 0  ;;  %s955_s18 = smov 0   ;;  %s957_s19 = smov 0   ;;  %s1109_s0 = inlined_call_operand.vmem [shape: s32[128,1], index: 0, kind: input, shape index: {}]   ;;  %s1110_s1 = inlined_call_operand.vmem [shape: s32[1,128], index: 1, kind: input, shape index: {}]   ;;  %s1111_s2 = inlined_call_operand.vmem [shape: f32[1,128], index: 2, kind: input, shape index: {}]   ;;  %s1112_s3 = inlined_call_operand.vmem [shape: f32[1,128], index: 3, kind: input, shape index: {}]   ;;  %s1113_s4 = inlined_call_operand.vmem [shape: f32[16,16], index: 4, kind: input, shape index: {}]   ;;  %s1114_s5 = inlined_call_operand.hbm [shape: f32[1,128], index: 5, kind: output, shape index: {}]  }
   0x1   :  { %s959_s20 = smov 0  }
   0x2 LB: > { %s717_s21 = sadd.s32 4294967295, %s912_s20   ;;  %s28_s22 = sadd.s32 1, %s908_s19  ;;  %s912_s20 = sphi %s959_s20, %s16_s20   ;;  %s908_s19 = sphi %s957_s19, %s1116_s19   ;;  %s904_s18 = sphi %s955_s18, %s1115_s18  }
   0x3   : > { %p30_p0 = scmp.ge.s32.totalorder %s28_s22, 2  ;;  %p722_p1 = scmp.ge.s32.totalorder %s912_s20, 1 }
   0x4   : > { %p217_p2 = scmp.lt.s32.totalorder %s912_s20, 3 }
   0x5   : > { %s1118_s22 = smov (%p30_p0, %s28_s22), 0 }
   0x6   : > { %p218_p3 = pnand %p722_p1, %p217_p2 }
   0x7   : > { %p259_p4 = scmp.eq.s32.totalorder (!%p218_p3), %s904_s18, 0 }
   0x8   : > { %221 = sbr.rel (%p218_p3) target bundleno = 690 (0x2b2), region = 40 }
   0xd   : > { %v979_v0 = vld [vmem:[%s1111_s2] sm:$0x1]  ;;  %264 = sbr.rel (!%p259_p4) target bundleno = 18 (0x12), region = 44  ;;  %v914_v1 = vmov (%p259_p4), 0.0  }
   0xe   : > { %265 = vst [vmem:[#allocation2] sm:$0x1] (%p259_p4), %v914_v1 }
  0x12 PF: > { %p724_p5 = scmp.ne.s32.totalorder %s904_s18, 0 }
  0x14   : > { %268 = sbr.rel (%p724_p5) target bundleno = 314 (0x13a), region = 48 }
  0x19   : > { %v284_v2 = vld [vmem:[%s1109_s0 + $0x78] sm:$0xff]  ;;  %v282_v3 = vld [vmem:[%s1109_s0 + $0x68] sm:$0xff]  ;;  %v915_v5 = vmov 0   ;;  %v281_v6 = vld [vmem:[%s1109_s0 + $0x60] sm:$0xff]  ;;  %v285_v19 = vlaneseq  ;;  %v916_v24 = vmov 1.0   ;;  %v917_v38 = vmov 0.0  }
  0x1a   : > { %v280_v4 = vld [vmem:[%s1109_s0 + $0x58] sm:$0xff]  ;;  %841 = vset.pattern.permute.xlu2 %v915_v5  ;;  %840 = vset.pattern.permute.xlu1 %v915_v5  ;;  %v283_v7 = vld [vmem:[%s1109_s0 + $0x70] sm:$0xff]  ;;  %v277_v9 = vld [vmem:[%s1109_s0 + $0x40] sm:$0xff]  ;;  %406 = vst [vmem:[#allocation3] sm:$0x1] %v917_v38 }
  0x1b   : > { %839 = vset.pattern.permute.xlu0 %v915_v5  ;;  %327 = vperm.xlu1 %840, %v282_v3   ;;  %v279_v8 = vld [vmem:[%s1109_s0 + $0x50] sm:$0xff]  ;;  %v278_v10 = vld [vmem:[%s1109_s0 + $0x48] sm:$0xff]  ;;  %v276_v11 = vld [vmem:[%s1109_s0 + $0x38] sm:$0xff]  ;;  %v286_v21 = vand.u32 127, %v285_v19 }
  0x1c   : > { %333 = vperm.xlu0 %839, %v284_v2   ;;  %321 = vperm.xlu2 %841, %v280_v4   ;;  %v274_v12 = vld [vmem:[%s1109_s0 + $0x28] sm:$0xff]  ;;  %v275_v13 = vld [vmem:[%s1109_s0 + $0x30] sm:$0xff]  ;;  %v273_v14 = vld [vmem:[%s1109_s0 + $0x20] sm:$0xff] }
  0x1d   : > { %v271_v15 = vld [vmem:[%s1109_s0 + $0x10] sm:$0xff]  ;;  %v272_v16 = vld [vmem:[%s1109_s0 + $0x18] sm:$0xff]  ;;  %v270_v17 = vld [vmem:[%s1109_s0 + $0x8] sm:$0xff] }
  0x1e   : > { %v269_v18 = vld [vmem:[%s1109_s0] sm:$0xff] }
  0x1f   : > { %v383_v39 = vld [vmem:[#allocation2] sm:$0x1] }
  0x23   : > { %324 = vperm.xlu1 %840, %v281_v6  }
  0x24   : > { %330 = vperm.xlu0 %839, %v283_v7   ;;  %318 = vperm.xlu2 %841, %v279_v8  }
  0x2b   : > { %312 = vperm.xlu1 %840, %v277_v9  }
  0x2c   : > { %315 = vperm.xlu0 %839, %v278_v10   ;;  %309 = vperm.xlu2 %841, %v276_v11  }
  0x33   : > { %303 = vperm.xlu1 %840, %v274_v12  }
  0x34   : > { %306 = vperm.xlu0 %839, %v275_v13   ;;  %300 = vperm.xlu2 %841, %v273_v14  }
  0x3b   : > { %294 = vperm.xlu1 %840, %v271_v15  }
  0x3c   : > { %297 = vperm.xlu0 %839, %v272_v16   ;;  %291 = vperm.xlu2 %841, %v270_v17  }
  0x44   : > { %288 = vperm.xlu0 %839, %v269_v18  }
  0x76   : > { %v322_v20 = vpop.permute.xlu2 %321 }
  0x77   : > { %vm346_vm4 = vcmp.eq.s32.totalorder %v322_v20, %v286_v21 }
  0x7e   : > { %v319_v25 = vpop.permute.xlu2 %318 }
  0x7f   : > { %vm345_vm5 = vcmp.eq.s32.totalorder %v319_v25, %v286_v21 }
  0x86   : > { %v310_v28 = vpop.permute.xlu2 %309 }
  0x87   : > { %vm342_vm8 = vcmp.eq.s32.totalorder %v310_v28, %v286_v21 }
  0x8d   : > { %v328_v22 = vpop.permute.xlu1 %327 }
  0x8e   : > { %v334_v23 = vpop.permute.xlu0 %333  ;;  %vm348_vm2 = vcmp.eq.s32.totalorder %v328_v22, %v286_v21  ;;  %v301_v32 = vpop.permute.xlu2 %300 }
  0x8f   : > { %vm350_vm0 = vcmp.eq.s32.totalorder %v334_v23, %v286_v21  ;;  %vm339_vm11 = vcmp.eq.s32.totalorder %v301_v32, %v286_v21 }
  0x90   : > { %741 = vmatpush.msk.msra.mxu0 %vm350_vm0, %v916_v24 }
  0x95   : > { %v325_v26 = vpop.permute.xlu1 %324 }
  0x96   : > { %v331_v27 = vpop.permute.xlu0 %330  ;;  %vm347_vm3 = vcmp.eq.s32.totalorder %v325_v26, %v286_v21  ;;  %v292_v36 = vpop.permute.xlu2 %291 }
  0x97   : > { %vm349_vm1 = vcmp.eq.s32.totalorder %v331_v27, %v286_v21  ;;  %vm336_vm14 = vcmp.eq.s32.totalorder %v292_v36, %v286_v21 }
  0x98   : > { %742 = vmatpush.msk.msra.mxu0 %vm349_vm1, %v916_v24 }
  0x9a   : > { %743 = vmatpush.msk.msra.mxu0 %vm348_vm2, %v916_v24 }
  0x9c   : > { %744 = vmatpush.msk.msra.mxu0 %vm347_vm3, %v916_v24 }
  0x9d   : > { %v313_v29 = vpop.permute.xlu1 %312 }
  0x9e   : > { %745 = vmatpush.msk.msra.mxu0 %vm346_vm4, %v916_v24  ;;  %v316_v30 = vpop.permute.xlu0 %315  ;;  %vm343_vm7 = vcmp.eq.s32.totalorder %v313_v29, %v286_v21 }
  0x9f   : > { %vm344_vm6 = vcmp.eq.s32.totalorder %v316_v30, %v286_v21 }
  0xa0   : > { %746 = vmatpush.msk.msra.mxu0 %vm345_vm5, %v916_v24 }
  0xa2   : > { %747 = vmatpush.msk.msra.mxu0 %vm344_vm6, %v916_v24 }
  0xa4   : > { %748 = vmatpush.msk.msra.mxu0 %vm343_vm7, %v916_v24 }
  0xa5   : > { %v304_v31 = vpop.permute.xlu1 %303 }
  0xa6   : > { %749 = vmatpush.msk.msra.mxu0 %vm342_vm8, %v916_v24  ;;  %v307_v33 = vpop.permute.xlu0 %306  ;;  %vm340_vm10 = vcmp.eq.s32.totalorder %v304_v31, %v286_v21 }
  0xa7   : > { %vm341_vm9 = vcmp.eq.s32.totalorder %v307_v33, %v286_v21 }
  0xa8   : > { %750 = vmatpush.msk.msra.mxu0 %vm341_vm9, %v916_v24 }
  0xaa   : > { %751 = vmatpush.msk.msra.mxu0 %vm340_vm10, %v916_v24 }
  0xac   : > { %752 = vmatpush.msk.msra.mxu0 %vm339_vm11, %v916_v24 }
  0xad   : > { %v295_v35 = vpop.permute.xlu1 %294 }
  0xae   : > { %v298_v34 = vpop.permute.xlu0 %297  ;;  %vm337_vm13 = vcmp.eq.s32.totalorder %v295_v35, %v286_v21 }
  0xaf   : > { %vm338_vm12 = vcmp.eq.s32.totalorder %v298_v34, %v286_v21 }
  0xb0   : > { %753 = vmatpush.msk.msra.mxu0 %vm338_vm12, %v916_v24 }
  0xb2   : > { %754 = vmatpush.msk.msra.mxu0 %vm337_vm13, %v916_v24 }
  0xb4   : > { %755 = vmatpush.msk.msra.mxu0 %vm336_vm14, %v916_v24 }
  0xb6   : > { %v289_v37 = vpop.permute.xlu0 %288 }
  0xb7   : > { %vm335_vm15 = vcmp.eq.s32.totalorder %v289_v37, %v286_v21 }
  0xb8   : > { %756 = vmatpush.msk.msra.mxu0 %vm335_vm15, %v916_v24 }
  0xb9   : > { %400 = vmatmul.f32.vlgmr.msra.gmra.mxu0 %v979_v0 }
 0x136   : > { %v401_v40 = vpop.f32.mrf.mxu0 }
 0x137   : > { %v404_v41 = vadd.f32 %v401_v40, %v383_v39 }
 0x139   : > { %405 = vst [vmem:[#allocation2] sm:$0x1] %v404_v41 }
 0x13a PF: > { %p757_p6 = scmp.ne.s32.totalorder %s904_s18, 1 }
 0x13c   : > { %410 = sbr.rel (%p757_p6) target bundleno = 684 (0x2ac), region = 52 }
 0x141   : > { %v412_v42 = vlaneseq  ;;  %v1038_v44 = vld [vmem:[%s1110_s1] ss:$0 sm:$0xff]  ;;  %v1043_v45 = vld [vmem:[%s1113_s4 + $0x8] sm:$0xff]  ;;  %v918_v49 = vmov 0   ;;  %v919_v52 = vmov 1.0   ;;  %v920_v56 = vmov 1  }
 0x142   : > { %842 = vset.pattern.permute.xlu0 %v918_v49  ;;  %844 = vset.pattern.permute.xlu1 %v918_v49  ;;  %v506_v51 = vld [vmem:[%s1113_s4] sm:$0xff]  ;;  %v921_v58 = vmov 2   ;;  %vm483_vm15 = vcmask 1040384   ;;  %v580_v7 = vperm.slane %v979_v0, 0  ;;  %v922_v11 = vmov 10  }
 0x143   : > { %v1033_v43 = vshrl.u32 %v412_v42, 7  ;;  %515 = vperm.xlu0 %842, %v1043_v45   ;;  %510 = vperm.xlu1 %844, %v506_v51   ;;  %v851_v3 = vld [vmem:[%s1112_s3] ss:$0 sm:$0xff]  ;;  %v923_v12 = vmov 3   ;;  %v549_v30 = vrot.slane %v1043_v45, 2 }
 0x144   : > { %846 = vset.pattern.permute.xlu2 %v921_v58  ;;  %v478_v4 = vld [vmem:[#allocation2] sm:$0x1] }
 0x145   : > { %v428_v46 = vadd.s32 120, %v1033_v43  ;;  %v427_v47 = vadd.s32 112, %v1033_v43  ;;  %v426_v48 = vadd.s32 104, %v1033_v43  ;;  %v425_v50 = vadd.s32 96, %v1033_v43  ;;  %539 = vperm.xlu2 %846, %v1043_v45  }
 0x146   : > { %v424_v53 = vadd.s32 88, %v1033_v43  ;;  %v423_v54 = vadd.s32 80, %v1033_v43  ;;  %v422_v55 = vadd.s32 72, %v1033_v43  ;;  %v421_v57 = vadd.s32 64, %v1033_v43 }
 0x147   : > { %vm445_vm0 = vcmp.eq.s32.totalorder %v428_v46, %v1038_v44  ;;  %vm444_vm1 = vcmp.eq.s32.totalorder %v427_v47, %v1038_v44  ;;  %vm443_vm2 = vcmp.eq.s32.totalorder %v426_v48, %v1038_v44  ;;  %vm442_vm3 = vcmp.eq.s32.totalorder %v425_v50, %v1038_v44 }
 0x148   : > { %774 = vmatpush.msk.msra.mxu0 %vm445_vm0, %v919_v52  ;;  %vm441_vm4 = vcmp.eq.s32.totalorder %v424_v53, %v1038_v44  ;;  %vm440_vm5 = vcmp.eq.s32.totalorder %v423_v54, %v1038_v44  ;;  %vm439_vm6 = vcmp.eq.s32.totalorder %v422_v55, %v1038_v44  ;;  %v420_v59 = vadd.s32 56, %v1033_v43 }
 0x149   : > { %vm438_vm7 = vcmp.eq.s32.totalorder %v421_v57, %v1038_v44  ;;  %v419_v60 = vadd.s32 48, %v1033_v43  ;;  %v418_v61 = vadd.s32 40, %v1033_v43  ;;  %v417_v62 = vadd.s32 32, %v1033_v43 }
 0x14a   : > { %775 = vmatpush.msk.msra.mxu0 %vm444_vm1, %v919_v52  ;;  %vm437_vm8 = vcmp.eq.s32.totalorder %v420_v59, %v1038_v44  ;;  %v416_v63 = vadd.s32 24, %v1033_v43  ;;  %v415_v1 = vadd.s32 16, %v1033_v43  ;;  %v414_v2 = vadd.s32 8, %v1033_v43 }
 0x14b   : > { %843 = vset.pattern.permute.xlu0 %v920_v56  ;;  %845 = vset.pattern.permute.xlu1 %v920_v56  ;;  %vm436_vm9 = vcmp.eq.s32.totalorder %v419_v60, %v1038_v44  ;;  %vm435_vm10 = vcmp.eq.s32.totalorder %v418_v61, %v1038_v44  ;;  %vm434_vm11 = vcmp.eq.s32.totalorder %v417_v62, %v1038_v44  ;;  %vm555_vm1 = vcmask 1041408  }
 0x14c   : > { %776 = vmatpush.msk.msra.mxu0 %vm443_vm2, %v919_v52  ;;  %526 = vperm.xlu0 %843, %v1043_v45   ;;  %vm433_vm12 = vcmp.eq.s32.totalorder %v416_v63, %v1038_v44  ;;  %vm432_vm13 = vcmp.eq.s32.totalorder %v415_v1, %v1038_v44  ;;  %vm431_vm14 = vcmp.eq.s32.totalorder %v414_v2, %v1038_v44  ;;  %vm552_vm2 = vcmask 80896  }
 0x14d   : > { %522 = vperm.xlu1 %845, %v506_v51   ;;  %535 = vperm.xlu2 %846, %v506_v51   ;;  %vm430_vm0 = vcmp.eq.s32.totalorder %v1033_v43, %v1038_v44  ;;  %v484_v5 = vsel %vm483_vm15, %v478_v4, %v851_v3 }
 0x14e   : > { %777 = vmatpush.msk.msra.mxu0 %vm442_vm3, %v919_v52 }
 0x150   : > { %778 = vmatpush.msk.msra.mxu0 %vm441_vm4, %v919_v52 }
 0x152   : > { %779 = vmatpush.msk.msra.mxu0 %vm440_vm5, %v919_v52 }
 0x154   : > { %780 = vmatpush.msk.msra.mxu0 %vm439_vm6, %v919_v52  ;;  %849 = vset.pattern.permute.xlu0 %v923_v12 }
 0x155   : > { %847 = vset.pattern.permute.xlu1 %v922_v11  ;;  %848 = vset.pattern.permute.xlu2 %v923_v12 }
 0x156   : > { %781 = vmatpush.msk.msra.mxu0 %vm438_vm7, %v919_v52  ;;  %547 = vperm.xlu1 %847, %v1043_v45  }
 0x157   : > { %587 = vperm.xlu2 %848, %v1043_v45  }
 0x158   : > { %782 = vmatpush.msk.msra.mxu0 %vm437_vm8, %v919_v52 }
 0x15a   : > { %783 = vmatpush.msk.msra.mxu0 %vm436_vm9, %v919_v52 }
 0x15c   : > { %784 = vmatpush.msk.msra.mxu0 %vm435_vm10, %v919_v52 }
 0x15e   : > { %785 = vmatpush.msk.msra.mxu0 %vm434_vm11, %v919_v52 }
 0x160   : > { %786 = vmatpush.msk.msra.mxu0 %vm433_vm12, %v919_v52 }
 0x162   : > { %787 = vmatpush.msk.msra.mxu0 %vm432_vm13, %v919_v52 }
 0x164   : > { %788 = vmatpush.msk.msra.mxu0 %vm431_vm14, %v919_v52 }
 0x166   : > { %789 = vmatpush.msk.msra.mxu0 %vm430_vm0, %v919_v52 }
 0x167   : > { %501 = vmatmul.f32.vlgmr.msra.gmra.mxu0 %v484_v5 }
 0x19f   : > { %v540_v14 = vpop.permute.xlu2 %539 }
 0x1a7   : > { %v536_v26 = vpop.permute.xlu2 %535 }
 0x1b1   : > { %v588_v36 = vpop.permute.xlu2 %587 }
 0x1b5   : > { %v516_v6 = vpop.permute.xlu0 %515  ;;  %v511_v13 = vpop.permute.xlu1 %510 }
 0x1b6   : > { %v582_v8 = vmul.f32 %v580_v7, %v516_v6 }
 0x1be   : > { %v527_v9 = vpop.permute.xlu0 %526 }
 0x1bf   : > { %v1087_v10 = vadd.f32 %v582_v8, %v527_v9  ;;  %v523_v18 = vpop.permute.xlu1 %522 }
 0x1e4   : > { %v502_v15 = vpop.f32.mrf.mxu0 }
 0x1e5   : > { %v505_v16 = vsub.f32 %v502_v15, %v979_v0  ;;  %v529_v17 = vperm.slane %v502_v15, 1  ;;  %v548_v0 = vpop.permute.xlu1 %547 }
 0x1e6   : > { %v550_v32 = vrot.slane %v548_v0, 2 }
 0x1e7   : > { %v518_v19 = vperm.slane %v505_v16, 0  ;;  %v531_v22 = vmul.f32 %v529_v17, %v527_v9  ;;  %v530_v23 = vmul.f32 %v529_v17, %v523_v18 }
 0x1e9   : > { %v519_v20 = vmul.f32 %v518_v19, %v511_v13  ;;  %v520_v21 = vmul.f32 %v518_v19, %v516_v6 }
 0x1eb   : > { %v532_v24 = vadd.f32 %v530_v23, %v519_v20  ;;  %v533_v25 = vadd.f32 %v531_v22, %v520_v21 }
 0x1ed   : > { %v543_v27 = vadd.f32 %v540_v14, %v533_v25  ;;  %v542_v28 = vadd.f32 %v536_v26, %v532_v24 }
 0x1ef   : > { %v545_v29 = vmax.f32 %v543_v27, 0.0  ;;  %v544_v31 = vmax.f32 %v542_v28, 0.0 }
 0x1f1   : > { %790 = vmatpush.msk.msra.mxu1 %vm555_vm1, %v545_v29 }
 0x1f3   : > { %574 = vmatpush.msra.mxu1 %v544_v31 }
 0x1f4   : > { %791 = vmatmul.msk.f32.vlgmr.msra.gmra.mxu1 %vm552_vm2, %v549_v30 }
 0x271   : > { %v576_v33 = vpop.f32.mrf.mxu1 }
 0x272   : > { %v577_v34 = vadd.f32 %v576_v33, %v550_v32 }
 0x274   : > { %v584_v35 = vperm.slane %v577_v34, 0  ;;  %v626_v58 = vrot.slane %v577_v34, 4 }
 0x276   : > { %v585_v37 = vmul.f32 %v584_v35, %v540_v14 }
 0x278   : > { %v590_v38 = vadd.f32 %v588_v36, %v585_v37 }
 0x27a   : > { %v591_v39 = vadd.f32 %v590_v38, %v1087_v10  ;;  %v612_v52 = vrot.slane %v590_v38, 2 }
 0x27c   : > { %v792_v40 = vmul.f32 -1.442695, %v591_v39 }
 0x27e   : > { %852 = vpow2.f32 %v792_v40 }
 0x284   : > { %v853_v41 = vpop.eup %852 }
 0x285   : > { %v595_v42 = vadd.f32 1.0, %v853_v41 }
 0x287   : > { %854 = vrcp.f32 %v595_v42  ;;  %v607_v46 = vand.u32 2147483648, %v595_v42  ;;  %v605_v48 = vand.u32 2147483647, %v595_v42  ;;  %vm601_vm4 = vweird.f32 %v595_v42 }
 0x289   : > { %v608_v50 = vor.u32 1.1754944e-38, %v607_v46  ;;  %vm606_vm6 = vcmp.eq.f32.partialorder %v605_v48, 8.507059e+37 }
 0x28d   : > { %v855_v43 = vpop.eup %854 }
 0x28e   : > { %v597_v44 = vmul.f32 %v855_v43, %v595_v42  ;;  %vm602_vm3 = vweird.f32 %v855_v43 }
 0x28f   : > { %vm603_vm5 = vmor %vm601_vm4, %vm602_vm3 }
 0x290   : > { %v598_v45 = vsub.f32 1.0, %v597_v44 }
 0x292   : > { %v599_v47 = vmul.f32 %v855_v43, %v598_v45 }
 0x294   : > { %v600_v49 = vadd.f32 %v855_v43, %v599_v47 }
 0x296   : > { %v604_v51 = vsel %vm603_vm5, %v855_v43, %v600_v49 }
 0x297   : > { %v609_v53 = vsel %vm606_vm6, %v608_v50, %v604_v51 }
 0x298   : > { %v614_v54 = vmul.f32 %v612_v52, %v609_v53  ;;  %v620_v59 = vsub.f32 1.0, %v609_v53  ;;  %v628_v62 = vmul.f32 %v626_v58, %v609_v53 }
 0x29a   : > { %v616_v55 = vrot.slane %v614_v54, 6 }
 0x29c   : > { %v618_v56 = vadd.f32 %v616_v55, %v1087_v10 }
 0x29e   : > { %856 = vtanh.f32 %v618_v56 }
 0x2a4   : > { %v857_v57 = vpop.eup %856 }
 0x2a5   : > { %v622_v60 = vrot.slane %v857_v57, 1 }
 0x2a7   : > { %v624_v61 = vmul.f32 %v622_v60, %v620_v59 }
 0x2a9   : > { %v629_v63 = vadd.f32 %v628_v62, %v624_v61 }
 0x2ab   : > { %630 = vst [vmem:[#allocation3 - $0x4] sm:$0x10] %v629_v63 }
 0x2ac PF: > { %p802_p7 = scmp.eq.s32.totalorder %s717_s21, 1  ;;  %s640_s26 = sshll.u32 %s1114_s5, 4  ;;  %s641_s26 = int_to_ptr.hbm [resolvable:$true] %s640_s26 }
 0x2ad   : > { %s924_s27 = smov [#allocation3]  }
 0x2ae   : > { %s638_s28 = sshll.u32 %s924_s27, 4  ;;  %s639_s28 = int_to_ptr.vmem [resolvable:$true] %s638_s28 }
 0x2af   : > { %799 = dma.vmem_to_hbm [thread:$0]  (%p802_p7), %s639_s28, 16, %s641_s26, [#allocation4]  }
 0x2b0   : > { %899 = dma.done.wait (%p802_p7), [#allocation4], 16  }
 0x2b1   : > { %901 = vsyncadd (%p802_p7), [#allocation4], 4294967280 }
 0x2b2 PF: > { %s16_s20 = sadd.s32 1, %s912_s20   ;;  %s1115_s18 = smov %s908_s19 }
 0x2b3   : > { %p13_p8 = scmp.ge.s32.totalorder %s16_s20, 4   ;;  %s1116_s19 = smov %s1118_s22 }
 0x2b5   :  { %15 = sbr.rel (!%p13_p8) target bundleno = 2 (0x2), region = 86 }
 0x2ba   :  { %654 = vsyncpa [#allocation4], 1 }
 0x2bb   :  { %656 = vsyncpa [#allocation4 + $0x1], 1 }

</bundles_post_ra>
